<compile_context>
chip_gen: v6e
topology: v6e:2x2x1
jax: 0.10.0
libtpu: 0.0.40
codegen_flags: <defaults>
</compile_context>

<pallas_src>
import functools

import jax
import jax.numpy as jnp
from jax.experimental import pallas as pl
from jax.experimental.pallas import tpu as pltpu


_LANES = 128
_SUBLANES = 8
_BF16_ROW_ALIGN = 16      # bf16 min tile is (16, 128)
_MAX_TILE_ROWS = 8192     # (8192,128) bf16 = 2 MiB/block; 2 inputs x 2 bufs = 8 MiB
_TINY_BATCH = 4096        # below this, a fused XLA expression beats pallas_call overhead

# Padding sentinels: with x = +30, 1 + exp(-x) rounds to exactly 1.0 in f32,
# so p = 1.0 exactly -> (1-p) = 0 kills the positive term and y = 1 -> (1-y) = 0
# kills the negative term.  Padded elements therefore contribute exactly 0.0
# without any in-kernel mask, regardless of reciprocal approximation error.
_PAD_LOGIT = 30.0
_PAD_LABEL = 1.0


def _round_up(x, m):
    return ((x + m - 1) // m) * m


def _num_tensorcores():
    """Leading 'parallel' grid-axis size: 2 TensorCores/chip on v7x, else 1."""
    try:
        kind = jax.devices()[0].device_kind.lower()
        if "v7" in kind:
            return 2
    except Exception:
        pass
    return 1


def _fploss1_torch_ref(x, y):
    """Bit-for-bit the torch formulation (sigmoid + raw logs). Test reference."""
    p = jax.nn.sigmoid(x)
    h_pos = (1.0 - p) * (y * jnp.log(p))
    h_neg = p * ((1.0 - y) * jnp.log(1.0 - p))
    return -jnp.mean(h_pos) - 2.0 * jnp.mean(h_neg)


def _fploss1_stable_ref(x, y):
    """Logit-form math, matching the kernel (finite for |x| > ~17 too)."""
    e = jnp.exp(-jnp.abs(x))
    log_p = jnp.minimum(x, 0.0) - jnp.log1p(e)   # log(sigmoid(x))
    log_1mp = log_p - x                          # log(1 - sigmoid(x))
    p = jax.nn.sigmoid(x)
    term = (1.0 - p) * y * log_p + 2.0 * p * (1.0 - y) * log_1mp
    return -jnp.mean(term)


def _fploss1_kernel(x_ref, y_ref, o_ref, *, tile_rows):
    """One (tile_rows, 128) tile of the FPLoss1 reduction.

    x_ref, y_ref : (tile_rows, 128) bf16 lane-dense logits / labels (padded
                   with +30 / 1.0, which contribute exactly zero)
    o_ref        : (1, 8, 128) f32 per-core resident element-wise partial sum
    """
    i = pl.program_id(1)   # reduction ("arbitrary") axis, last in the grid

    x = x_ref[...].astype(jnp.float32)
    y = y_ref[...].astype(jnp.float32)

    # 2 heavy EUP transcendentals per element (exp + log1p); sigmoid itself
    # comes from a near-free approximate reciprocal instead of a third exp.
    e = jnp.exp(-jnp.abs(x))
    log_p = jnp.minimum(x, 0.0) - jnp.log1p(e)   # log(sigmoid(x))
    log_1mp = log_p - x                          # log(1 - sigmoid(x))
    r = pl.reciprocal(1.0 + e, approx=True)      # 1 / (1 + exp(-|x|))
    p = jnp.where(x >= 0.0, r, 1.0 - r)          # sigmoid(x)

    # Elementwise fpcls numerator: (1-p)*y*log(p) + 2*p*(1-y)*log(1-p).
    # The overall negation and 1/B mean scale are applied once, outside.
    term = (1.0 - p) * y * log_p + 2.0 * p * (1.0 - y) * log_1mp

    # Reduce only over vreg-aligned row groups (pure VPU adds); the final
    # cross-lane reduce of the (8,128) partial happens once in XLA outside.
    psum = term.reshape(tile_rows // _SUBLANES, _SUBLANES, _LANES).sum(axis=0)

    @pl.when(i == 0)
    def _init():
        o_ref[...] = jnp.zeros_like(o_ref)

    o_ref[...] += psum[None, :, :]


def fploss1_forward(output, labels, train=True, *, force_pallas=False):
    """JAX/Pallas equivalent of FPLoss1.forward. Returns the scalar fpcls.

    `train` is accepted and ignored, matching the torch module.
    """
    # TODO(synk): the torch module's `if fpcls.item() is np.nan: pdb.set_trace()`
    # host-side debugger hook has no device-side equivalent and is omitted.
    x = output[:, 0].reshape(-1)     # channel-0 logits, (B,)
    y = labels.reshape(-1)           # (B,)
    n = x.shape[0]

    if n < _TINY_BATCH and not force_pallas:
        # pallas_call overhead dwarfs a few thousand elements of math.
        return _fploss1_stable_ref(x.astype(jnp.float32), y.astype(jnp.float32))

    num_cores = _num_tensorcores()

    # Lane-dense bf16 layout.  slice + bf16 cast + pad + reshape fuse into a
    # single XLA loop fusion: one read of `output`/`labels`, one half-width
    # (bf16) write of the padded slabs the kernel then streams.
    rows_needed = max(1, -(-n // _LANES))
    tile_rows = min(_MAX_TILE_ROWS, _round_up(rows_needed, _BF16_ROW_ALIGN))
    rows_padded = _round_up(rows_needed, num_cores * tile_rows)
    tiles_per_core = rows_padded // (num_cores * tile_rows)
    n_padded = rows_padded * _LANES

    x2 = jnp.pad(x.astype(jnp.bfloat16), (0, n_padded - n),
                 constant_values=_PAD_LOGIT).reshape(rows_padded, _LANES)
    y2 = jnp.pad(y.astype(jnp.bfloat16), (0, n_padded - n),
                 constant_values=_PAD_LABEL).reshape(rows_padded, _LANES)

    kernel = functools.partial(_fploss1_kernel, tile_rows=tile_rows)

    row_spec = pl.BlockSpec(
        (tile_rows, _LANES), lambda c, i: (c * tiles_per_core + i, 0))

    partials = pl.pallas_call(
        kernel,
        out_shape=jax.ShapeDtypeStruct(
            (num_cores, _SUBLANES, _LANES), jnp.float32),
        grid_spec=pltpu.PrefetchScalarGridSpec(
            num_scalar_prefetch=0,
            grid=(num_cores, tiles_per_core),
            in_specs=[row_spec, row_spec],
            out_specs=pl.BlockSpec(
                (1, _SUBLANES, _LANES), lambda c, i: (c, 0, 0)),
        ),
        compiler_params=pltpu.CompilerParams(
            dimension_semantics=("parallel", "arbitrary"),
            vmem_limit_bytes=32 << 20),
    )(x2, y2)

    # Final reduce of <= 2*8*128 partials + (-1/B) mean scale: one tiny XLA
    # fusion.  (An in-kernel SMEM-scalar epilogue was considered but kept out
    # to avoid a vector->scalar reduce/store in the kernel.)
    return jnp.sum(partials) * (-1.0 / n)


if __name__ == "__main__":
    key = jax.random.PRNGKey(0)
    k_out, k_lab = jax.random.split(key)

    batch, channels = 64, 4
    output = jax.random.normal(k_out, (batch, channels), dtype=jnp.float32)
    labels = jax.random.bernoulli(k_lab, p=0.5, shape=(batch, 1)).astype(
        jnp.float32)

    # Force the Pallas path so the kernel itself is exercised at this small size.
    fpcls = fploss1_forward(output, labels, force_pallas=True)
    jax.block_until_ready(fpcls)

    # Reference on the same bf16-rounded channel-0 logits the kernel consumes;
    # tolerance covers the approximate-reciprocal sigmoid.
    x_bf = output[:, 0].astype(jnp.bfloat16).astype(jnp.float32)
    y_f = labels.reshape(-1).astype(jnp.float32)
    ref_stable = _fploss1_stable_ref(x_bf, y_f)
    ref_torch = _fploss1_torch_ref(x_bf, y_f)

    assert jnp.isfinite(fpcls), fpcls
    assert jnp.allclose(fpcls, ref_stable, atol=1e-2, rtol=1e-2), (fpcls, ref_stable)
    assert jnp.allclose(fpcls, ref_torch, atol=1e-2, rtol=1e-2), (fpcls, ref_torch)

    print("KERNEL_OK")
</pallas_src>

<mosaic_0001>
module attributes {stable_mosaic.version = 11 : i64} {
  func.func @_fploss1_kernel(%arg0: i32, %arg1: i32, %arg2: memref<16x128xbf16, #tpu.memory_space<vmem>>, %arg3: memref<16x128xbf16, #tpu.memory_space<vmem>>, %arg4: memref<1x8x128xf32, #tpu.memory_space<vmem>>) attributes {dimension_semantics = [#tpu.dimension_semantics<parallel>, #tpu.dimension_semantics<arbitrary>], iteration_bounds = array<i64: 1, 1>, scalar_prefetch = 0 : i64, scratch_operands = 0 : i64, tpu.core_type = #tpu.core_type<tc>, window_params = [{transform_indices = @transform_0, window_bounds = array<i64: 16, 128>}, {transform_indices = @transform_1, window_bounds = array<i64: 16, 128>}, {transform_indices = @transform_2, window_bounds = array<i64: 1, 8, 128>}]} {
    %c0 = arith.constant 0 : index
    %c0_0 = arith.constant 0 : index
    %0 = vector.load %arg2[%c0, %c0_0] : memref<16x128xbf16, #tpu.memory_space<vmem>>, vector<16x128xbf16>
    %1 = arith.extf %0 : vector<16x128xbf16> to vector<16x128xf32>
    %c0_1 = arith.constant 0 : index
    %c0_2 = arith.constant 0 : index
    %2 = vector.load %arg3[%c0_1, %c0_2] : memref<16x128xbf16, #tpu.memory_space<vmem>>, vector<16x128xbf16>
    %3 = arith.extf %2 : vector<16x128xbf16> to vector<16x128xf32>
    %4 = math.absf %1 : vector<16x128xf32>
    %cst = arith.constant 0.000000e+00 : f32
    %5 = vector.broadcast %cst : f32 to vector<16x128xf32>
    %6 = arith.subf %5, %4 : vector<16x128xf32>
    %7 = math.exp %6 : vector<16x128xf32>
    %cst_3 = arith.constant 0.000000e+00 : f32
    %8 = vector.broadcast %cst_3 : f32 to vector<16x128xf32>
    %9 = arith.minimumf %1, %8 : vector<16x128xf32>
    %10 = math.log1p %7 : vector<16x128xf32>
    %11 = arith.subf %9, %10 : vector<16x128xf32>
    %12 = arith.subf %11, %1 : vector<16x128xf32>
    %cst_4 = arith.constant 1.000000e+00 : f32
    %13 = vector.broadcast %cst_4 : f32 to vector<16x128xf32>
    %14 = arith.addf %13, %7 : vector<16x128xf32>
    %15 = tpu.reciprocal %14 {approx = true} : vector<16x128xf32> -> vector<16x128xf32>
    %cst_5 = arith.constant 0.000000e+00 : f32
    %16 = vector.broadcast %cst_5 : f32 to vector<16x128xf32>
    %17 = arith.cmpf oge, %1, %16 : vector<16x128xf32>
    %cst_6 = arith.constant 1.000000e+00 : f32
    %18 = vector.broadcast %cst_6 : f32 to vector<16x128xf32>
    %19 = arith.subf %18, %15 : vector<16x128xf32>
    %20 = arith.select %17, %15, %19 : vector<16x128xi1>, vector<16x128xf32>
    %cst_7 = arith.constant 1.000000e+00 : f32
    %21 = vector.broadcast %cst_7 : f32 to vector<16x128xf32>
    %22 = arith.subf %21, %20 : vector<16x128xf32>
    %23 = arith.mulf %22, %3 : vector<16x128xf32>
    %24 = arith.mulf %23, %11 : vector<16x128xf32>
    %cst_8 = arith.constant 2.000000e+00 : f32
    %25 = vector.broadcast %cst_8 : f32 to vector<16x128xf32>
    %26 = arith.mulf %25, %20 : vector<16x128xf32>
    %cst_9 = arith.constant 1.000000e+00 : f32
    %27 = vector.broadcast %cst_9 : f32 to vector<16x128xf32>
    %28 = arith.subf %27, %3 : vector<16x128xf32>
    %29 = arith.mulf %26, %28 : vector<16x128xf32>
    %30 = arith.mulf %29, %12 : vector<16x128xf32>
    %31 = arith.addf %24, %30 : vector<16x128xf32>
    %32 = vector.shape_cast %31 : vector<16x128xf32> to vector<2x8x128xf32>
    %cst_10 = arith.constant dense<0.000000e+00> : vector<8x128xf32>
    %33 = vector.multi_reduction <add>, %32, %cst_10 [0] : vector<2x8x128xf32> to vector<8x128xf32>
    %c0_i32 = arith.constant 0 : i32
    %34 = arith.cmpi eq, %arg1, %c0_i32 : i32
    %35 = arith.extui %34 : i1 to i32
    %c0_i32_11 = arith.constant 0 : i32
    %36 = arith.cmpi ne, %35, %c0_i32_11 : i32
    scf.if %36 {
      %cst_18 = arith.constant 0.000000e+00 : f32
      %41 = vector.broadcast %cst_18 : f32 to vector<1x8x128xf32>
      %c0_19 = arith.constant 0 : index
      %c0_20 = arith.constant 0 : index
      %c0_21 = arith.constant 0 : index
      %42 = vector.load %arg4[%c0_19, %c0_20, %c0_21] : memref<1x8x128xf32, #tpu.memory_space<vmem>>, vector<1x8x128xf32>
      tpu.vector_store %arg4[%c0_19, %c0_20, %c0_21], %41 {strides = array<i32>} : memref<1x8x128xf32, #tpu.memory_space<vmem>>, vector<1x8x128xf32>,
    } else {
    }
    %c0_12 = arith.constant 0 : index
    %c0_13 = arith.constant 0 : index
    %c0_14 = arith.constant 0 : index
    %37 = vector.load %arg4[%c0_12, %c0_13, %c0_14] : memref<1x8x128xf32, #tpu.memory_space<vmem>>, vector<1x8x128xf32>
    %38 = vector.shape_cast %33 : vector<8x128xf32> to vector<1x8x128xf32>
    %39 = arith.addf %37, %38 : vector<1x8x128xf32>
    %c0_15 = arith.constant 0 : index
    %c0_16 = arith.constant 0 : index
    %c0_17 = arith.constant 0 : index
    %40 = vector.load %arg4[%c0_15, %c0_16, %c0_17] : memref<1x8x128xf32, #tpu.memory_space<vmem>>, vector<1x8x128xf32>
    tpu.vector_store %arg4[%c0_15, %c0_16, %c0_17], %39 {strides = array<i32>} : memref<1x8x128xf32, #tpu.memory_space<vmem>>, vector<1x8x128xf32>,
    return
  }
  func.func @transform_0(%arg0: i32, %arg1: i32) -> (i32, i32) {
    %c1_i32 = arith.constant 1 : i32
    %0 = arith.muli %arg0, %c1_i32 : i32
    %1 = arith.addi %0, %arg1 : i32
    %c0_i32 = arith.constant 0 : i32
    %c0_i32_0 = arith.constant 0 : i32
    return %1, %c0_i32 : i32, i32
  }
  func.func @transform_1(%arg0: i32, %arg1: i32) -> (i32, i32) {
    %c1_i32 = arith.constant 1 : i32
    %0 = arith.muli %arg0, %c1_i32 : i32
    %1 = arith.addi %0, %arg1 : i32
    %c0_i32 = arith.constant 0 : i32
    %c0_i32_0 = arith.constant 0 : i32
    return %1, %c0_i32 : i32, i32
  }
  func.func @transform_2(%arg0: i32, %arg1: i32) -> (i32, i32, i32) {
    %c0_i32 = arith.constant 0 : i32
    %c0_i32_0 = arith.constant 0 : i32
    %c0_i32_1 = arith.constant 0 : i32
    return %arg0, %c0_i32, %c0_i32_0 : i32, i32, i32
  }
}

</mosaic_0001>

<bundles_post_ra>
// kernel: tpu_custom_call.1
= control target key start
LH: loop header
LB: loop body
LE: loop exit
PB: predicated region body
PF: predicated region fallthrough
CT: control target
= control target key end

     0   :  { %7 = vsyncpa [#allocation3], 0  ;;  %s276_s0 = inlined_call_operand.hbm [shape: bf16[16,128], index: 0, kind: input, shape index: {}]   ;;  %s277_s1 = inlined_call_operand.hbm [shape: bf16[16,128], index: 1, kind: input, shape index: {}]   ;;  %s278_s2 = inlined_call_operand.hbm [shape: f32[1,8,128], index: 2, kind: output, shape index: {}]  }
   0x1   :  { %8 = vsyncpa [#allocation6], 0 }
   0x2   :  { %9 = vsyncpa [#allocation4], 0  ;;  %s235_s9 = smov [#allocation2]  }
   0x3   :  { %s19_s10 = sshll.u32 %s235_s9, 4  ;;  %s20_s10 = int_to_ptr.vmem [resolvable:$true] %s19_s10 }
   0x4   :  { %s177_s11 = scalar_lea.vmem %s20_s10, 128  ;;  %p182_p1 = scmp.lt.s32.totalorder %s20_s10, %s20_s10 }
   0x5   :  { %p178_p0 = scmp.ne.s32.totalorder %s20_s10, %s177_s11  ;;  %p183_p2 = scmp.lt.s32.totalorder %s177_s11, %s177_s11 }
   0x7   :  { %p184_p3 = por %p183_p2, %p182_p1 }
   0x9   :  { %p185_p4 = pnand %p184_p3, %p178_p0 }
   0xb   :  { %188 = shalt.err (!%p185_p4)
}
   0xc   :  { %s236_s12 = smov 64   ;;  %s237_s13 = smov 4  }
   0xd   :  { %25 = dma.hbm_to_vmem [thread:$0]  %s276_s0, 128, %s20_s10, [#allocation3], %s236_s12, %s236_s12, %s237_s13  }
   0xe   :  { %s238_s16 = smov [#allocation5]  }
   0xf   :  { %s35_s17 = sshll.u32 %s238_s16, 4  ;;  %s36_s17 = int_to_ptr.vmem [resolvable:$true] %s35_s17 }
  0x10   :  { %s197_s18 = scalar_lea.vmem %s36_s17, 128  ;;  %p202_p6 = scmp.lt.s32.totalorder %s36_s17, %s36_s17 }
  0x11   :  { %p198_p5 = scmp.ne.s32.totalorder %s36_s17, %s197_s18  ;;  %p203_p7 = scmp.lt.s32.totalorder %s197_s18, %s197_s18 }
  0x13   :  { %p204_p8 = por %p203_p7, %p202_p6 }
  0x15   :  { %p205_p9 = pnand %p204_p8, %p198_p5 }
  0x17   :  { %208 = shalt.err (!%p205_p9)
}
  0x18   :  { %41 = dma.hbm_to_vmem [thread:$0]  %s277_s1, 128, %s36_s17, [#allocation6], %s236_s12, %s236_s12, %s237_s13  }
  0x19   :  { %229 = dma.done.wait [#allocation3], 128  }
  0x1a   :  { %230 = vsyncadd [#allocation3], 4294967168 }
  0x1b   :  { %231 = dma.done.wait [#allocation6], 128  }
  0x1c   :  { %232 = vsyncadd [#allocation6], 4294967168  ;;  %v144_v0 = vld [vmem:[#allocation2] sm:$0xff]   ;;  %v148_v18 = vld [vmem:[#allocation5] sm:$0xff]   ;;  %s239_s0 = smov [#allocation7]  }
  0x1d   :  { %v261_v1 = vunpack.c.l.bf16 %v144_v0  ;;  %v263_v2 = vunpack.c.h.bf16 %v144_v0  ;;  %v149_v22 = vunpack.c.l.bf16 %v148_v18  ;;  %v150_v26 = vunpack.c.h.bf16 %v148_v18  ;;  %s133_s1 = sshll.u32 %s239_s0, 4  ;;  %s134_s1 = int_to_ptr.vmem [resolvable:$true] %s133_s1 }
  0x1e   :  { %s209_s21 = scalar_lea.vmem %s134_s1, 128  ;;  %p214_p11 = scmp.lt.s32.totalorder %s134_s1, %s134_s1 }
  0x1f   :  { %v60_v3 = vand.u32 2147483647, %v261_v1  ;;  %v61_v4 = vand.u32 2147483647, %v263_v2  ;;  %v68_v23 = vmin.f32 %v261_v1, 0.0  ;;  %v69_v27 = vmin.f32 %v263_v2, 0.0  ;;  %p210_p10 = scmp.ne.s32.totalorder %s134_s1, %s209_s21  ;;  %p215_p12 = scmp.lt.s32.totalorder %s209_s21, %s209_s21 }
  0x20   :  { %vm96_vm2 = vcmp.ge.f32.partialorder %v261_v1, 0.0  ;;  %vm97_vm3 = vcmp.ge.f32.partialorder %v263_v2, 0.0  ;;  %v110_v37 = vsub.f32 1.0, %v149_v22  ;;  %v111_v40 = vsub.f32 1.0, %v150_v26 }
  0x21   :  { %v62_v5 = vsub.f32 0.0, %v60_v3  ;;  %v63_v6 = vsub.f32 0.0, %v61_v4  ;;  %p216_p13 = por %p215_p12, %p214_p11 }
  0x23   :  { %v64_v7 = vmul.f32 1.442695, %v62_v5  ;;  %v66_v8 = vmul.f32 1.442695, %v63_v6  ;;  %p217_p0 = pnand %p216_p13, %p210_p10 }
  0x25   :  { %157 = vpow2.f32 %v64_v7 }
  0x26   :  { %159 = vpow2.f32 %v66_v8 }
  0x32   :  { %v158_v9 = vpop.eup %157 }
  0x33   :  { %v160_v10 = vpop.eup %159  ;;  %v70_v11 = vadd.f32 1.0, %v158_v9  ;;  %v73_v13 = vmul.f32 -0.5, %v158_v9  ;;  %v76_v16 = vand.u32 2147483647, %v158_v9 }
  0x34   :  { %v79_v12 = vadd.f32 1.0, %v160_v10  ;;  %v82_v14 = vmul.f32 -0.5, %v160_v10  ;;  %v85_v19 = vand.u32 2147483647, %v160_v10 }
  0x35   :  { %161 = vlog2.f32 %v70_v11  ;;  %v74_v15 = vadd.f32 1.0, %v73_v13  ;;  %vm77_vm0 = vcmp.lt.f32.partialorder %v76_v16, 0.0004427343 }
  0x36   :  { %163 = vlog2.f32 %v79_v12  ;;  %v83_v17 = vadd.f32 1.0, %v82_v14  ;;  %vm86_vm1 = vcmp.lt.f32.partialorder %v85_v19, 0.0004427343 }
  0x37   :  { %165 = vrcp.f32 %v70_v11  ;;  %v75_v20 = vmul.f32 %v158_v9, %v74_v15 }
  0x38   :  { %167 = vrcp.f32 %v79_v12  ;;  %v84_v24 = vmul.f32 %v160_v10, %v83_v17 }
  0x42   :  { %v162_v21 = vpop.eup %161 }
  0x43   :  { %v164_v25 = vpop.eup %163  ;;  %v72_v28 = vmul.f32 0.6931472, %v162_v21 }
  0x44   :  { %v166_v29 = vpop.eup %165  ;;  %v81_v30 = vmul.f32 0.6931472, %v164_v25 }
  0x45   :  { %v168_v31 = vpop.eup %167  ;;  %v78_v32 = vsel %vm77_vm0, %v75_v20, %v72_v28  ;;  %v98_v33 = vsub.f32 1.0, %v166_v29 }
  0x46   :  { %v87_v34 = vsel %vm86_vm1, %v84_v24, %v81_v30  ;;  %v88_v35 = vsub.f32 %v68_v23, %v78_v32  ;;  %v99_v36 = vsub.f32 1.0, %v168_v31 }
  0x47   :  { %v89_v38 = vsub.f32 %v69_v27, %v87_v34  ;;  %v100_v39 = vsel %vm96_vm2, %v166_v29, %v98_v33 }
  0x48   :  { %v90_v41 = vsub.f32 %v88_v35, %v261_v1  ;;  %v101_v42 = vsel %vm97_vm3, %v168_v31, %v99_v36  ;;  %v102_v43 = vsub.f32 1.0, %v100_v39  ;;  %v108_v44 = vmul.f32 2.0, %v100_v39 }
  0x49   :  { %v91_v45 = vsub.f32 %v89_v38, %v263_v2  ;;  %v103_v46 = vsub.f32 1.0, %v101_v42  ;;  %v109_v47 = vmul.f32 2.0, %v101_v42 }
  0x4a   :  { %v104_v48 = vmul.f32 %v149_v22, %v102_v43  ;;  %v112_v49 = vmul.f32 %v110_v37, %v108_v44 }
  0x4b   :  { %v105_v50 = vmul.f32 %v150_v26, %v103_v46  ;;  %v113_v51 = vmul.f32 %v111_v40, %v109_v47 }
  0x4c   :  { %v106_v52 = vmul.f32 %v104_v48, %v88_v35  ;;  %v114_v53 = vmul.f32 %v112_v49, %v90_v41 }
  0x4d   :  { %v107_v54 = vmul.f32 %v105_v50, %v89_v38  ;;  %v115_v55 = vmul.f32 %v113_v51, %v91_v45 }
  0x4e   :  { %v116_v56 = vadd.f32 %v114_v53, %v106_v52 }
  0x4f   :  { %v117_v57 = vadd.f32 %v115_v55, %v107_v54 }
  0x51   :  { %v118_v58 = vadd.f32 %v117_v57, %v116_v56 }
  0x53   :  { %126 = vst [vmem:[#allocation7] sm:$0xff] %v118_v58 }
  0x54   :  { %220 = shalt.err (!%p217_p0)
}
  0x55   :  { %136 = dma.vmem_to_hbm [thread:$0]  %s134_s1, 128, %s278_s2, [#allocation4]  }
  0x56   :  { %233 = dma.done.wait [#allocation4], 128  }
  0x57   :  { %234 = vsyncadd [#allocation4], 4294967168 }
  0x58   :  { %140 = vsyncpa [#allocation3], 1 }
  0x59   :  { %141 = vsyncpa [#allocation6], 1 }
  0x5a   :  { %142 = vsyncpa [#allocation4], 1 }

</bundles_post_ra>
